<compile_context>
chip_gen: v7x
topology: tpu7x:2x2x1
jax: 0.10.0
libtpu: 0.0.40
codegen_flags: <defaults>
</compile_context>

<pallas_src>
import jax
import jax.numpy as jnp
from jax.experimental import pallas as pl
from jax.experimental.pallas import tpu as pltpu

HIDDEN = 256          # fixed by the PyTorch module (nn.Linear(states, 256))
NEG_INF = -1e30       # pad-lane logit; exp() underflows it to exactly 0.0


def pinn_kernel(x_ref, w1_ref, b1_ref, w2_ref, b2_ref, out_ref):
    # x_ref:  (TB, states)      bf16, one real state per row
    # w1_ref: (states, HIDDEN)  bf16     b1_ref: (1, HIDDEN)  f32
    # w2_ref: (HIDDEN, A_PAD)   bf16     b2_ref: (1, A_PAD)   f32 (-1e30 in pad lanes)
    # out_ref:(TB, A_PAD)       f32

    # firstLayer + ReLU: bf16 MXU operands, f32 accumulate, f32 elementwise
    # (keeps the VPU epilogue in f32, which is required on v5e anyway).
    h = jnp.dot(x_ref[...], w1_ref[...], preferred_element_type=jnp.float32)
    h = jnp.maximum(h + b1_ref[...], 0.0)

    # FinalLayer: lane-dense (128-wide) padded logits -> unmasked vst on the store.
    logits = jnp.dot(h.astype(jnp.bfloat16), w2_ref[...],
                     preferred_element_type=jnp.float32) + b2_ref[...]

    # softmax over the action axis (== dim=0 of the original 1-D output).
    m = jnp.max(logits, axis=-1, keepdims=True)
    e = jnp.exp(logits - m)
    denom = jnp.sum(e, axis=-1, keepdims=True)
    r = pl.reciprocal(denom, approx=True)      # EUP slot (otherwise idle here)
    r = r * (2.0 - denom * r)                  # one Newton step -> ~f32 accuracy
    out_ref[...] = e * r


def init_params(key, states, actions):
    """nn.Linear-style uniform(-1/sqrt(fan_in), +) init; weights pre-transposed to
    (in, out), stored bf16, action dim padded ONCE to a 128-lane width so the
    per-call wrapper stays free of padding ops."""
    a_pad = 128 * pl.cdiv(max(actions, 1), 128)
    k1, k2, k3, k4 = jax.random.split(key, 4)
    lim1 = 1.0 / (states ** 0.5)
    lim2 = 1.0 / (HIDDEN ** 0.5)
    w1 = jax.random.uniform(k1, (states, HIDDEN), jnp.float32, -lim1, lim1)
    b1 = jax.random.uniform(k2, (1, HIDDEN), jnp.float32, -lim1, lim1)
    w2 = jax.random.uniform(k3, (HIDDEN, actions), jnp.float32, -lim2, lim2)
    b2 = jax.random.uniform(k4, (1, actions), jnp.float32, -lim2, lim2)
    w2p = jnp.zeros((HIDDEN, a_pad), jnp.bfloat16).at[:, :actions].set(
        w2.astype(jnp.bfloat16))
    b2p = jnp.full((1, a_pad), NEG_INF, jnp.float32).at[:, :actions].set(b2)
    return w1.astype(jnp.bfloat16), b1, w2p, b2p


def pinn_forward(state, w1, b1, w2p, b2p, actions):
    """Pallas piNN.forward: accepts a single (states,) vector (like the PyTorch
    module) or a batch (B, states); returns (actions,) / (B, actions) probs."""
    single = state.ndim == 1
    x = state.reshape(1, -1) if single else state
    b, states = x.shape
    a_pad = w2p.shape[1]

    # batch tile: 8 sublanes for tiny batches, 128 rows when there is enough work
    tb = 128 if b >= 128 else 8
    b_pad = tb * pl.cdiv(b, tb)
    if b_pad != b:                       # no-op on aligned batches (the hot path)
        x = jnp.pad(x, ((0, b_pad - b), (0, 0)))
    x = x.astype(jnp.bfloat16)

    cost = pl.CostEstimate(
        flops=2 * b_pad * (states * HIDDEN + HIDDEN * a_pad),
        transcendentals=b_pad * a_pad,
        bytes_accessed=int(x.size * 2 + w1.size * 2 + w2p.size * 2
                           + b1.size * 4 + b2p.size * 4 + b_pad * a_pad * 4),
    )

    out = pl.pallas_call(
        pinn_kernel,
        out_shape=jax.ShapeDtypeStruct((b_pad, a_pad), jnp.float32),
        grid_spec=pl.GridSpec(
            grid=(b_pad // tb,),
            in_specs=[
                pl.BlockSpec((tb, states), lambda i: (i, 0)),      # x: tiled over batch
                pl.BlockSpec((states, HIDDEN), lambda i: (0, 0)),  # w1: VMEM-resident
                pl.BlockSpec((1, HIDDEN), lambda i: (0, 0)),       # b1
                pl.BlockSpec((HIDDEN, a_pad), lambda i: (0, 0)),   # w2 (lane-padded)
                pl.BlockSpec((1, a_pad), lambda i: (0, 0)),        # b2 (lane-padded)
            ],
            out_specs=pl.BlockSpec((tb, a_pad), lambda i: (i, 0)),
        ),
        compiler_params=pltpu.CompilerParams(
            dimension_semantics=("parallel",)),   # shards batch tiles across v7x's 2 TCs
        cost_estimate=cost,
    )(x, w1, b1, w2p, b2p)

    out = out[:b, :actions]
    return out[0] if single else out


def reference_forward(state, w1, b1, w2p, b2p, actions):
    """Pure-JAX reference with the same quantization points as the kernel."""
    x = state.reshape(1, -1) if state.ndim == 1 else state
    h = jnp.dot(x.astype(jnp.bfloat16), w1, preferred_element_type=jnp.float32) + b1
    h = jnp.maximum(h, 0.0)
    logits = jnp.dot(h.astype(jnp.bfloat16), w2p,
                     preferred_element_type=jnp.float32) + b2p
    probs = jax.nn.softmax(logits, axis=-1)[:, :actions]
    return probs[0] if state.ndim == 1 else probs


# TODO(synk): piNN.logValueAction is a trivial elementwise log on the returned
# probabilities; it needs no kernel (jnp.log(probs) outside the pallas_call).

if __name__ == "__main__":
    STATES, ACTIONS, BATCH = 8, 4, 16
    key = jax.random.PRNGKey(0)
    pkey, skey = jax.random.split(key)
    w1, b1, w2p, b2p = init_params(pkey, STATES, ACTIONS)
    batch_states = jax.random.normal(skey, (BATCH, STATES), jnp.float32)

    probs = jax.block_until_ready(
        pinn_forward(batch_states, w1, b1, w2p, b2p, ACTIONS))
    ref = reference_forward(batch_states, w1, b1, w2p, b2p, ACTIONS)

    assert probs.shape == (BATCH, ACTIONS)
    assert jnp.allclose(probs, ref, atol=1e-4, rtol=1e-4), \
        float(jnp.max(jnp.abs(probs - ref)))
    assert jnp.allclose(jnp.sum(probs, axis=-1), 1.0, atol=1e-5)

    # original single-state piNN.forward signature still works
    p1 = jax.block_until_ready(
        pinn_forward(batch_states[0], w1, b1, w2p, b2p, ACTIONS))
    assert p1.shape == (ACTIONS,)
    assert jnp.allclose(p1, ref[0], atol=1e-4, rtol=1e-4)

    print("KERNEL_OK")
</pallas_src>

<mosaic_0001>
module attributes {stable_mosaic.version = 11 : i64} {
  func.func @pinn_kernel(%arg0: i32, %arg1: memref<8x8xbf16, #tpu.memory_space<vmem>>, %arg2: memref<8x256xbf16, #tpu.memory_space<vmem>>, %arg3: memref<1x256xf32, #tpu.memory_space<vmem>>, %arg4: memref<256x128xbf16, #tpu.memory_space<vmem>>, %arg5: memref<1x128xf32, #tpu.memory_space<vmem>>, %arg6: memref<8x128xf32, #tpu.memory_space<vmem>>) attributes {dimension_semantics = [#tpu.dimension_semantics<parallel>], iteration_bounds = array<i64: 2>, scalar_prefetch = 0 : i64, scratch_operands = 0 : i64, tpu.core_type = #tpu.core_type<tc>, window_params = [{transform_indices = @transform_0, window_bounds = array<i64: 8, 8>}, {pipeline_mode = #tpu.pipeline_mode<synchronous>, transform_indices = @transform_1, window_bounds = array<i64: 8, 256>}, {pipeline_mode = #tpu.pipeline_mode<synchronous>, transform_indices = @transform_2, window_bounds = array<i64: 1, 256>}, {pipeline_mode = #tpu.pipeline_mode<synchronous>, transform_indices = @transform_3, window_bounds = array<i64: 256, 128>}, {pipeline_mode = #tpu.pipeline_mode<synchronous>, transform_indices = @transform_4, window_bounds = array<i64: 1, 128>}, {transform_indices = @transform_5, window_bounds = array<i64: 8, 128>}]} {
    %c0 = arith.constant 0 : index
    %c0_0 = arith.constant 0 : index
    %0 = vector.load %arg1[%c0, %c0_0] : memref<8x8xbf16, #tpu.memory_space<vmem>>, vector<8x8xbf16>
    %c0_1 = arith.constant 0 : index
    %c0_2 = arith.constant 0 : index
    %1 = vector.load %arg2[%c0_1, %c0_2] : memref<8x256xbf16, #tpu.memory_space<vmem>>, vector<8x256xbf16>
    %cst = arith.constant dense<0.000000e+00> : vector<8x256xf32>
    %2 = tpu.matmul %0, %1, %cst {dimension_numbers = #tpu.dot_dimension_numbers<[1], [0], [0], [1], [0, 0, 1, 1], [], []>} : vector<8x8xbf16>, vector<8x256xbf16>, vector<8x256xf32> -> vector<8x256xf32>
    %c0_3 = arith.constant 0 : index
    %c0_4 = arith.constant 0 : index
    %3 = vector.load %arg3[%c0_3, %c0_4] : memref<1x256xf32, #tpu.memory_space<vmem>>, vector<1x256xf32>
    %4 = vector.broadcast %3 : vector<1x256xf32> to vector<8x256xf32>
    %5 = arith.addf %2, %4 : vector<8x256xf32>
    %cst_5 = arith.constant 0.000000e+00 : f32
    %6 = vector.broadcast %cst_5 : f32 to vector<8x256xf32>
    %7 = arith.maximumf %5, %6 : vector<8x256xf32>
    %8 = arith.truncf %7 : vector<8x256xf32> to vector<8x256xbf16>
    %c0_6 = arith.constant 0 : index
    %c0_7 = arith.constant 0 : index
    %9 = vector.load %arg4[%c0_6, %c0_7] : memref<256x128xbf16, #tpu.memory_space<vmem>>, vector<256x128xbf16>
    %cst_8 = arith.constant dense<0.000000e+00> : vector<8x128xf32>
    %10 = tpu.matmul %8, %9, %cst_8 {dimension_numbers = #tpu.dot_dimension_numbers<[1], [0], [0], [1], [0, 0, 1, 1], [], []>} : vector<8x256xbf16>, vector<256x128xbf16>, vector<8x128xf32> -> vector<8x128xf32>
    %c0_9 = arith.constant 0 : index
    %c0_10 = arith.constant 0 : index
    %11 = vector.load %arg5[%c0_9, %c0_10] : memref<1x128xf32, #tpu.memory_space<vmem>>, vector<1x128xf32>
    %12 = vector.broadcast %11 : vector<1x128xf32> to vector<8x128xf32>
    %13 = arith.addf %10, %12 : vector<8x128xf32>
    %cst_11 = arith.constant dense<0xFF800000> : vector<8xf32>
    %14 = vector.multi_reduction <maximumf>, %13, %cst_11 [1] : vector<8x128xf32> to vector<8xf32>
    %15 = vector.shape_cast %14 : vector<8xf32> to vector<8x1xf32>
    %16 = vector.broadcast %15 : vector<8x1xf32> to vector<8x128xf32>
    %17 = arith.subf %13, %16 : vector<8x128xf32>
    %18 = math.exp %17 : vector<8x128xf32>
    %cst_12 = arith.constant dense<0.000000e+00> : vector<8xf32>
    %19 = vector.multi_reduction <add>, %18, %cst_12 [1] : vector<8x128xf32> to vector<8xf32>
    %20 = vector.shape_cast %19 : vector<8xf32> to vector<8x1xf32>
    %21 = tpu.reciprocal %20 {approx = true} : vector<8x1xf32> -> vector<8x1xf32>
    %22 = arith.mulf %20, %21 : vector<8x1xf32>
    %cst_13 = arith.constant 2.000000e+00 : f32
    %23 = vector.broadcast %cst_13 : f32 to vector<8x1xf32>
    %24 = arith.subf %23, %22 : vector<8x1xf32>
    %25 = arith.mulf %21, %24 : vector<8x1xf32>
    %26 = vector.broadcast %25 : vector<8x1xf32> to vector<8x128xf32>
    %27 = arith.mulf %18, %26 : vector<8x128xf32>
    %c0_14 = arith.constant 0 : index
    %c0_15 = arith.constant 0 : index
    %28 = vector.load %arg6[%c0_14, %c0_15] : memref<8x128xf32, #tpu.memory_space<vmem>>, vector<8x128xf32>
    tpu.vector_store %arg6[%c0_14, %c0_15], %27 {strides = array<i32>} : memref<8x128xf32, #tpu.memory_space<vmem>>, vector<8x128xf32>,
    return
  }
  func.func @transform_0(%arg0: i32) -> (i32, i32) {
    %c0_i32 = arith.constant 0 : i32
    %c0_i32_0 = arith.constant 0 : i32
    return %arg0, %c0_i32 : i32, i32
  }
  func.func @transform_1(%arg0: i32) -> (i32, i32) {
    %c0_i32 = arith.constant 0 : i32
    %c0_i32_0 = arith.constant 0 : i32
    %c0_i32_1 = arith.constant 0 : i32
    return %c0_i32, %c0_i32_0 : i32, i32
  }
  func.func @transform_2(%arg0: i32) -> (i32, i32) {
    %c0_i32 = arith.constant 0 : i32
    %c0_i32_0 = arith.constant 0 : i32
    %c0_i32_1 = arith.constant 0 : i32
    return %c0_i32, %c0_i32_0 : i32, i32
  }
  func.func @transform_3(%arg0: i32) -> (i32, i32) {
    %c0_i32 = arith.constant 0 : i32
    %c0_i32_0 = arith.constant 0 : i32
    %c0_i32_1 = arith.constant 0 : i32
    return %c0_i32, %c0_i32_0 : i32, i32
  }
  func.func @transform_4(%arg0: i32) -> (i32, i32) {
    %c0_i32 = arith.constant 0 : i32
    %c0_i32_0 = arith.constant 0 : i32
    %c0_i32_1 = arith.constant 0 : i32
    return %c0_i32, %c0_i32_0 : i32, i32
  }
  func.func @transform_5(%arg0: i32) -> (i32, i32) {
    %c0_i32 = arith.constant 0 : i32
    %c0_i32_0 = arith.constant 0 : i32
    return %arg0, %c0_i32 : i32, i32
  }
}

</mosaic_0001>

<bundles_post_ra>
// kernel: tpu_custom_call.1
= control target key start
LH: loop header
LB: loop body
LE: loop exit
PB: predicated region body
PF: predicated region fallthrough
CT: control target
= control target key end

     0   :  { %10 = vsyncpa [#allocation3], 0  ;;  %s989_s0 = inlined_call_operand.vmem [shape: bf16[16,8], index: 0, kind: input, shape index: {}]   ;;  %s990_s1 = inlined_call_operand.vmem [shape: bf16[8,256], index: 1, kind: input, shape index: {}]   ;;  %s991_s2 = inlined_call_operand.vmem [shape: f32[1,256], index: 2, kind: input, shape index: {}]   ;;  %s992_s3 = inlined_call_operand.hbm [shape: bf16[256,128], index: 3, kind: input, shape index: {}]   ;;  %s993_s4 = inlined_call_operand.vmem [shape: f32[1,128], index: 4, kind: input, shape index: {}]   ;;  %s994_s5 = inlined_call_operand.hbm [shape: f32[16,128], index: 5, kind: output, shape index: {}]  }
   0x1   :  { %11 = vsyncpa [#allocation4], 0 }
   0x2   :  { %13 = vsyncpa [#allocation4 + $0x1], 0  ;;  %s845_s18 = smov 0   ;;  %s847_s19 = smov 0  }
   0x3   :  { %s849_s20 = smov 0   ;;  %s851_s21 = smov 0  }
   0x4 LB: > { %s866_s22 = sadd.s32 4294967295, %s808_s21   ;;  %s584_s23 = sadd.s32 4294967294, %s808_s21   ;;  %s808_s21 = sphi %s851_s21, %s1010_s21   ;;  %s804_s20 = sphi %s849_s20, %s1009_s20   ;;  %s800_s19 = sphi %s847_s19, %s1008_s19   ;;  %s796_s18 = sphi %s845_s18, %s1007_s18  }
   0x5   : > { %s870_s24 = sadd.s32 1, %s808_s21   ;;  %s136_s25 = sadd.s32 1, %s804_s20 }
   0x6   : > { %s133_s26 = ssub.s32 %s808_s21, %s870_s24  ;;  %p146_p0 = scmp.ne.s32.totalorder %s804_s20, %s800_s19 }
   0x7   : > { %p134_p1 = scmp.eq.s32.totalorder %s133_s26, 0  ;;  %p147_p2 = scmp.eq.s32.totalorder %s866_s22, 1 }
   0x8   : > { %p152_p3 = scmp.ne.s32.totalorder %s800_s19, %s796_s18  ;;  %p153_p4 = scmp.eq.s32.totalorder %s584_s23, 1 }
   0x9   : > { %s881_s27 = scalar_select %p134_p1, %s804_s20, %s136_s25  }
   0xa   : > { %p883_p5 = por %p147_p2, %p146_p0  ;;  %p887_p6 = por %p153_p4, %p152_p3 }
   0xb   : > { %p585_p7 = scmp.ge.s32.totalorder %s808_s21, 1  ;;  %p160_p8 = scmp.lt.s32.totalorder %s808_s21, 3 }
   0xc   : > { %s998_s28 = scalar_select %p883_p5, 1, 0 }
   0xd   : > { %s999_s29 = scalar_select %p887_p6, 1, 0 }
   0xe   : > { %p995_p9 = scmp.eq.s32.totalorder %s866_s22, 0  ;;  %p894_p10 = pnand %p585_p7, %p160_p8 }
   0xf   : > { %s810_s6 = smov [#allocation2]   ;;  %s714_s11 = scalar_lea.hbm %s992_s3, 2048 }
  0x10   : > { %s1000_s30 = scalar_select %p894_p10, 1, 0 }
  0x11   : > { %s178_s7 = sshll.u32 %s810_s6, 4  ;;  %p645_p11 = pneg %p894_p10  ;;  %s179_s7 = int_to_ptr.vmem [resolvable:$true] %s178_s7 }
  0x12   : > { %p715_p13 = scmp.ne.s32.totalorder %s992_s3, %s714_s11  ;;  %p721_p3 = scmp.lt.u32.totalorder %s714_s11, %s992_s3 }
  0x13   : > { %p902_p12 = pnand %p995_p9, %p645_p11 }
  0x15   : > { %p716_p0 = pneg %p902_p12 }
  0x17   : > { %p717_p1 = pnand %p716_p0, %p715_p13 }
  0x19   : > { %p718_p2 = pneg %p717_p1 }
  0x1b   : > { %p723_p4 = pnand %p721_p3, %p718_p2 }
  0x1d   : > { %726 = shalt.err (!%p723_p4)
}
  0x1e   : > { %s727_s16 = scalar_lea.vmem %s179_s7, 2048  ;;  %p735_p9 = scmp.lt.s32.totalorder %s179_s7, %s179_s7 }
  0x1f   : > { %p728_p7 = scmp.ne.s32.totalorder %s179_s7, %s727_s16  ;;  %p736_p6 = scmp.lt.s32.totalorder %s727_s16, %s727_s16 }
  0x21   : > { %p730_p8 = pnand %p728_p7, %p716_p0  ;;  %p737_p5 = por %p736_p6, %p735_p9 }
  0x23   : > { %p731_p11 = pneg %p730_p8 }
  0x25   : > { %p738_p10 = pnand %p737_p5, %p731_p11 }
  0x27   : > { %741 = shalt.err (!%p738_p10)
}
  0x28   : > { %s811_s17 = smov 64   ;;  %s812_s23 = smov 4  }
  0x29   : > { %648 = dma.hbm_to_vmem [thread:$0]  (!%p902_p12), %s992_s3, 2048, %s179_s7, [#allocation3], %s811_s17, %s811_s17, %s812_s23  }
  0x2a   : > { %p1002_p13 = scmp.ne.s32.totalorder %s1000_s30, 0 }
  0x2b   : > { %p1003_p1 = scmp.eq.s32.totalorder (!%p1002_p13), %s866_s22, 0 }
  0x2c   : > { %204 = sbr.rel (%p1002_p13) target bundleno = 828 (0x33c), region = 40 }
  0x33   : > { %787 = dma.done.wait (%p1003_p1), [#allocation3], 2048   ;;  %p1004_p0 = pmov %p1003_p1 }
  0x34   : > { %p231_p5 = scmp.lt.s32.totalorder %s866_s22, 1  ;;  %v813_v0 = vmov 0   ;;  %v237_v1 = vld [vmem:[%s990_s1] sm:$0xff]  ;;  %vm259_vm0 = vcmask 1043456   ;;  %v694_v4 = vld [vmem:[#allocation2 + $0x40] sm:$0xff]   ;;  %v696_v8 = vld [vmem:[#allocation2 + $0x48] sm:$0xff]   ;;  %v240_v22 = vlaneseq }
  0x35   : > { %789 = vsyncadd (%p1004_p0), [#allocation3], 4294965248  ;;  %298 = vmatprep.mubr.bf16.mxu0 %v813_v0  ;;  %v593_v2 = vcombine.high %v237_v1, %v237_v1  ;;  %v592_v3 = vcombine.low %v237_v1, %v237_v1  ;;  %v695_v6 = vld [vmem:[#allocation2] sm:$0xff]   ;;  %617 = vmatprep.subr.bf16.mxu1 %v694_v4  ;;  %vm255_vm1 = vcmask 64512   ;;  %v697_v9 = vld [vmem:[#allocation2 + $0x8] sm:$0xff]   ;;  %s228_s16 = sand.u32 1, %s800_s19  }
  0x36   : > { %s232_s6 = scalar_select %p231_p5, %s866_s22, 1  ;;  %618 = vmatpush3.bf16.msra.mxu1 %v695_v6  ;;  %v698_v10 = vld [vmem:[#allocation2 + $0x50] sm:$0xff]   ;;  %v700_v12 = vld [vmem:[#allocation2 + $0x58] sm:$0xff]   ;;  %v702_v14 = vld [vmem:[#allocation2 + $0x60] sm:$0xff]   ;;  %v241_v23 = vshrl.u32 %v240_v22, 7 }
  0x37   : > { %594 = vmatprep.subr.msk.bf16.mxu0 %vm259_vm0, %v593_v2  ;;  %v261_v7 = vsel %vm259_vm0, %v592_v3, 0  ;;  %619 = vmatprep.subr.bf16.mxu1 %v696_v8  ;;  %v699_v11 = vld [vmem:[#allocation2 + $0x10] sm:$0xff]   ;;  %v701_v13 = vld [vmem:[#allocation2 + $0x18] sm:$0xff]   ;;  %v703_v15 = vld [vmem:[#allocation2 + $0x20] sm:$0xff]   ;;  %s590_s17 = sshll.u32 %s228_s16, 3  ;;  %s614_s23 = sshll.u32 %s866_s22, 7 }
  0x38   : > { %s591_s8 = sshll.u32 %s232_s6, 2  ;;  %267 = vmatpush1.bf16.msra.mxu0 %v261_v7  ;;  %v704_v16 = vld [vmem:[#allocation2 + $0x68] sm:$0xff]   ;;  %v706_v18 = vld [vmem:[#allocation2 + $0x70] sm:$0xff]   ;;  %v708_v20 = vld [vmem:[#allocation2 + $0x78] sm:$0xff]   ;;  %v242_v24 = vsub.s32 0, %v241_v23  ;;  %v246_v26 = vsub.s32 1, %v241_v23  ;;  %s947_s9 = scalar_lea.hbm %s994_s5, %s614_s23 }
  0x39   : > { %s234_s7 = scalar_lea.vmem %s989_s0, %s591_s8  ;;  %v705_v17 = vld [vmem:[#allocation2 + $0x28] sm:$0xff]   ;;  %v707_v19 = vld [vmem:[#allocation2 + $0x30] sm:$0xff]   ;;  %v709_v21 = vld [vmem:[#allocation2 + $0x38] sm:$0xff]   ;;  %s230_s25 = scalar_lea.vmem [#allocation5], %s590_s17 }
  0x3a   : > { %v236_v5 = vld [vmem:[%s234_s7] sm:$0xf]  ;;  %620 = vmatpush3.bf16.msra.mxu1 %v697_v9  ;;  %s513_s26 = sshll.u32 %s230_s25, 4  ;;  %s500_s10 = scalar_lea.sflag [#allocation4], %s228_s16  ;;  %s949_s26 = int_to_ptr.vmem [resolvable:$true] %s513_s26 }
  0x3b   : > { %595 = vmatmul.mubr.msk.bf16.vlgmr.msra.gmra.mrb[0].mxu0 %vm255_vm1, %v236_v5  ;;  %621 = vmatprep.subr.bf16.mxu1 %v698_v10  ;;  %v238_v25 = vld [vmem:[%s991_s2] sm:$0x3]  ;;  %s742_s7 = scalar_lea.vmem %s949_s26, 128  ;;  %p1005_p9 = scmp.ne.s32.totalorder %s998_s28, 0 }
  0x3c   : > { %v243_v27 = vrot.slane %v238_v25, %v242_v24  ;;  %v247_v28 = vrot.slane %v238_v25, %v246_v26  ;;  %v596_v41 = vld [vmem:[%s993_s4] ss:$0 sm:$0xff]  ;;  %p743_p6 = scmp.ne.s32.totalorder %s949_s26, %s742_s7  ;;  %s814_s22 = smov [#allocation5]  }
  0x3d   : > { %s746_s11 = sshll.u32 %s814_s22, 4  ;;  %s747_s11 = int_to_ptr.vmem [resolvable:$false] %s746_s11 }
  0x3e   : > { %622 = vmatpush3.bf16.msra.mxu1 %v699_v11  ;;  %p744_p10 = pnand %p743_p6, %p1005_p9  ;;  %s748_s30 = scalar_lea.vmem %s747_s11, 256 }
  0x3f   : > { %623 = vmatprep.subr.bf16.mxu1 %v700_v12  ;;  %p749_p2 = scmp.lt.s32.totalorder %s949_s26, %s747_s11  ;;  %p750_p3 = scmp.lt.s32.totalorder %s748_s30, %s742_s7 }
  0x40   : > { %p745_p12 = pneg %p744_p10 }
  0x41   : > { %p751_p4 = por %p750_p3, %p749_p2 }
  0x42   : > { %624 = vmatpush3.bf16.msra.mxu1 %v701_v13 }
  0x43   : > { %625 = vmatprep.subr.bf16.mxu1 %v702_v14  ;;  %p752_p7 = pnand %p751_p4, %p745_p12 }
  0x46   : > { %626 = vmatpush3.bf16.msra.mxu1 %v703_v15 }
  0x47   : > { %627 = vmatprep.subr.bf16.mxu1 %v704_v16 }
  0x4a   : > { %628 = vmatpush3.bf16.msra.mxu1 %v705_v17 }
  0x4b   : > { %629 = vmatprep.subr.bf16.mxu1 %v706_v18 }
  0x4e   : > { %630 = vmatpush3.bf16.msra.mxu1 %v707_v19 }
  0x4f   : > { %631 = vmatprep.subr.bf16.mxu1 %v708_v20 }
  0x52   : > { %632 = vmatpush3.bf16.msra.mxu1 %v709_v21 }
 0x10e   : > { %v300_v29 = vpop.f32.mrb[0].mxu0 }
 0x10f   : > { %v301_v30 = vadd.f32 %v300_v29, %v243_v27  ;;  %v302_v31 = vpop.f32.mrb[1].mxu0 }
 0x110   : > { %v303_v32 = vadd.f32 %v302_v31, %v247_v28  ;;  %v304_v33 = vpop.f32.mrb[2].mxu0 }
 0x111   : > { %v307_v34 = vmax.f32 %v301_v30, 0.0  ;;  %v305_v35 = vpop.f32.mrb[3].mxu0 }
 0x112   : > { %v308_v36 = vmax.f32 %v303_v32, 0.0 }
 0x113   : > { %v309_v38 = vpack.c.bf16 %v307_v34, %v307_v34 }
 0x114   : > { %v310_v37 = vpack.c.bf16 %v308_v36, %v308_v36 }
 0x116   : > { %478 = vmatprep.mubr.bf16.mxu1 %v310_v37 }
 0x117   : > { %479 = vmatmul.mubr.bf16.vlgmr.msra.gmra.mrb[0].mxu1 %v309_v38 }
 0x1ea   : > { %v633_v39 = vpop.f32.mrb[0].mxu1 }
 0x1eb   : > { %v634_v40 = vpop.f32.mrb[1].mxu1 }
 0x1ec   : > { %v635_v42 = vadd.f32 %v634_v40, %v633_v39  ;;  %v636_v43 = vpop.f32.mrb[2].mxu1 }
 0x1ed   : > { %v637_v44 = vpop.f32.mrb[3].mxu1 }
 0x1ee   : > { %v481_v45 = vadd.f32 %v635_v42, %v596_v41 }
 0x1f0   : > { %486 = vmax.xlane.f32.xlu0 %v481_v45 }
 0x27d   : > { %v487_v46 = vpop.xlane.xlu0 %486 }
 0x27e   : > { %v488_v47 = vsub.f32 %v481_v45, %v487_v46 }
 0x280   : > { %v489_v48 = vmul.f32 1.442695, %v488_v47 }
 0x282   : > { %710 = vpow2.f32 %v489_v48 }
 0x28c   : > { %v711_v49 = vpop.eup %710 }
 0x28d   : > { %491 = vadd.xlane.f32.xlu0 %v711_v49 }
 0x31a   : > { %v492_v50 = vpop.xlane.xlu0 %491 }
 0x31b   : > { %712 = vrcp.f32 %v492_v50 }
 0x325   : > { %v713_v51 = vpop.eup %712 }
 0x326   : > { %v494_v52 = vmul.f32 %v713_v51, %v492_v50 }
 0x328   : > { %v495_v53 = vsub.f32 2.0, %v494_v52 }
 0x32a   : > { %v496_v54 = vmul.f32 %v713_v51, %v495_v53 }
 0x32c   : > { %v497_v55 = vmul.f32 %v711_v49, %v496_v54 }
 0x32e   : > { %498 = vst [vmem:[%s230_s25] sm:$0xff] %v497_v55 }
 0x32f   : > { %755 = shalt.err (!%p752_p7)
}
 0x330   : > { %s756_s12 = scalar_lea.hbm %s947_s9, 128  ;;  %s760_s15 = scalar_lea.hbm %s994_s5, 256 }
 0x331   : > { %p757_p8 = scmp.ne.s32.totalorder %s947_s9, %s756_s12  ;;  %p761_p1 = scmp.lt.u32.totalorder %s947_s9, %s994_s5 }
 0x332   : > { %p762_p0 = scmp.lt.u32.totalorder %s760_s15, %s756_s12  ;;  %p764_p6 = scmp.lt.u32.totalorder %s756_s12, %s947_s9 }
 0x333   : > { %p758_p11 = pnand %p757_p8, %p1005_p9 }
 0x334   : > { %p763_p5 = por %p762_p0, %p761_p1 }
 0x335   : > { %p759_p13 = pneg %p758_p11 }
 0x336   : > { %p765_p10 = por %p764_p6, %p763_p5 }
 0x338   : > { %p766_p12 = pnand %p765_p10, %p759_p13 }
 0x33a   : > { %769 = shalt.err (!%p766_p12)
}
 0x33b   : > { %643 = dma.vmem_to_hbm [thread:$0]  (%p1005_p9), %s949_s26, 128, %s947_s9, %s500_s10  }
 0x33c PF: > { %p655_p2 = scmp.ge.s32.totalorder %s808_s21, 2  ;;  %s525_s23 = sand.u32 1, %s796_s18  }
 0x33d   : > { %p1006_p3 = scmp.ne.s32.totalorder %s999_s29, 0  ;;  %s526_s25 = scalar_lea.sflag [#allocation4], %s525_s23 }
 0x33f   : > { %p650_p4 = pnand %p655_p2, %p1006_p3 }
 0x341   : > { %791 = dma.done.wait (!%p650_p4), %s526_s25, 128  }
 0x342   : > { %793 = vsyncadd (!%p650_p4), %s526_s25, 4294967168  ;;  %p16_p7 = scmp.ge.s32.totalorder %s870_s24, 4   ;;  %s1007_s18 = smov %s800_s19 }
 0x343   : > { %s1008_s19 = smov %s804_s20  ;;  %s1009_s20 = smov %s881_s27 }
 0x344   : > { %s1010_s21 = smov %s870_s24  ;;  %18 = sbr.rel (!%p16_p7) target bundleno = 4 (0x4), region = 80 }
 0x34b   :  { %531 = vsyncpa [#allocation3], 1 }
 0x34c   :  { %533 = vsyncpa [#allocation3 + $0x1], 1 }
 0x34d   :  { %534 = vsyncpa [#allocation4], 1 }
 0x34e   :  { %536 = vsyncpa [#allocation4 + $0x1], 1 }

</bundles_post_ra>
